<compile_context>
chip_gen: v7x
topology: tpu7x:2x2x1
jax: 0.10.0
libtpu: 0.0.40
codegen_flags: <defaults>
</compile_context>

<pallas_src>
import functools

import jax
import jax.numpy as jnp
from jax import lax
from jax.experimental import pallas as pl
from jax.experimental.pallas import tpu as pltpu

IN_FEATURES = 2048
OUT_FEATURES = 64


def _linear_kernel(x_ref, w_ref, b_ref, o_ref):
    """o = x @ W^T + b for one batch tile; full K in a single MXU dot."""
    x = x_ref[...].astype(w_ref.dtype)       # cast activations to weight dtype (bf16)
    # Contract x's K dim against w's last dim (w stays in PyTorch (N, K) layout).
    acc = lax.dot_general(
        x, w_ref[...],
        dimension_numbers=(((1,), (1,)), ((), ())),
        preferred_element_type=jnp.float32,
    )
    o_ref[...] = (acc + b_ref[...]).astype(o_ref.dtype)


def _round_up(v, m):
    return (v + m - 1) // m * m


@functools.partial(jax.jit, static_argnames=("block_b",))
def sketch_fc_forward(x, w, b, *, block_b=256):
    """x: (B, 2048); w: (64, 2048) PyTorch layout (any float dtype); b: (64,)."""
    B, K = x.shape
    N, Kw = w.shape
    assert K == Kw, "weight / input feature mismatch"

    # Batch tile: multiple of 8 sublanes, at most block_b; pad B up so the
    # grid covers it exactly.  Weight + bias stay resident across batch tiles.
    tm = min(block_b, _round_up(B, 8))
    Bp = _round_up(B, tm)
    if Bp != B:
        x = jnp.pad(x, ((0, Bp - B), (0, 0)))

    b2 = b.reshape(1, N).astype(jnp.float32)
    out_dtype = x.dtype

    cost = pl.CostEstimate(
        flops=2 * Bp * K * N,
        transcendentals=0,
        bytes_accessed=(x.size * x.dtype.itemsize
                        + w.size * w.dtype.itemsize
                        + b2.size * b2.dtype.itemsize
                        + Bp * N * jnp.dtype(out_dtype).itemsize),
    )

    out = pl.pallas_call(
        _linear_kernel,
        out_shape=jax.ShapeDtypeStruct((Bp, N), out_dtype),
        grid_spec=pltpu.PrefetchScalarGridSpec(
            num_scalar_prefetch=0,
            grid=(Bp // tm,),
            in_specs=[
                pl.BlockSpec((tm, K), lambda i: (i, 0)),   # x tile (streamed)
                pl.BlockSpec((N, K), lambda i: (0, 0)),    # full weight, resident
                pl.BlockSpec((1, N), lambda i: (0, 0)),    # bias, resident
            ],
            out_specs=pl.BlockSpec((tm, N), lambda i: (i, 0)),
        ),
        compiler_params=pltpu.CompilerParams(
            dimension_semantics=("parallel",),             # batch axis -> megacore
        ),
        cost_estimate=cost,
    )(x, w, b2)
    return out[:B]


def init_params(key):
    """Deterministic init mimicking nn.Linear default (uniform +-1/sqrt(fan_in))."""
    kw, kb = jax.random.split(key)
    bound = 1.0 / (IN_FEATURES ** 0.5)
    w = jax.random.uniform(
        kw, (OUT_FEATURES, IN_FEATURES), jnp.float32, -bound, bound
    )
    b = jax.random.uniform(kb, (OUT_FEATURES,), jnp.float32, -bound, bound)
    # Store the weight in bf16: MXU-native on v5e/v6e/v7x and halves HBM traffic.
    return w.astype(jnp.bfloat16), b


if __name__ == "__main__":
    key = jax.random.PRNGKey(0)
    k_x, k_p = jax.random.split(key)

    B = 8  # small demo batch
    x = jax.random.normal(k_x, (B, IN_FEATURES), jnp.float32)
    w, b = init_params(k_p)

    out = jax.block_until_ready(sketch_fc_forward(x, w, b))

    # Sanity check against a plain JAX reference using the same stored weights.
    ref = x @ w.astype(jnp.float32).T + b
    assert out.shape == (B, OUT_FEATURES)
    assert jnp.allclose(out, ref, atol=2e-2, rtol=2e-2), "mismatch vs reference"

    print("KERNEL_OK")
</pallas_src>

<mosaic_0001>
module attributes {stable_mosaic.version = 11 : i64} {
  func.func @_linear_kernel(%arg0: i32, %arg1: memref<8x2048xf32, #tpu.memory_space<vmem>>, %arg2: memref<64x2048xbf16, #tpu.memory_space<vmem>>, %arg3: memref<1x64xf32, #tpu.memory_space<vmem>>, %arg4: memref<8x64xf32, #tpu.memory_space<vmem>>) attributes {dimension_semantics = [#tpu.dimension_semantics<parallel>], iteration_bounds = array<i64: 1>, scalar_prefetch = 0 : i64, scratch_operands = 0 : i64, tpu.core_type = #tpu.core_type<tc>, window_params = [{transform_indices = @transform_0, window_bounds = array<i64: 8, 2048>}, {pipeline_mode = #tpu.pipeline_mode<synchronous>, transform_indices = @transform_1, window_bounds = array<i64: 64, 2048>}, {pipeline_mode = #tpu.pipeline_mode<synchronous>, transform_indices = @transform_2, window_bounds = array<i64: 1, 64>}, {transform_indices = @transform_3, window_bounds = array<i64: 8, 64>}]} {
    %c0 = arith.constant 0 : index
    %c0_0 = arith.constant 0 : index
    %0 = vector.load %arg1[%c0, %c0_0] : memref<8x2048xf32, #tpu.memory_space<vmem>>, vector<8x2048xf32>
    %1 = arith.truncf %0 : vector<8x2048xf32> to vector<8x2048xbf16>
    %c0_1 = arith.constant 0 : index
    %c0_2 = arith.constant 0 : index
    %2 = vector.load %arg2[%c0_1, %c0_2] : memref<64x2048xbf16, #tpu.memory_space<vmem>>, vector<64x2048xbf16>
    %cst = arith.constant dense<0.000000e+00> : vector<8x64xf32>
    %3 = tpu.matmul %1, %2, %cst {dimension_numbers = #tpu.dot_dimension_numbers<[1], [1], [0], [0], [0, 0, 1, 0], [], []>} : vector<8x2048xbf16>, vector<64x2048xbf16>, vector<8x64xf32> -> vector<8x64xf32>
    %c0_3 = arith.constant 0 : index
    %c0_4 = arith.constant 0 : index
    %4 = vector.load %arg3[%c0_3, %c0_4] : memref<1x64xf32, #tpu.memory_space<vmem>>, vector<1x64xf32>
    %5 = vector.broadcast %4 : vector<1x64xf32> to vector<8x64xf32>
    %6 = arith.addf %3, %5 : vector<8x64xf32>
    %c0_5 = arith.constant 0 : index
    %c0_6 = arith.constant 0 : index
    %7 = vector.load %arg4[%c0_5, %c0_6] : memref<8x64xf32, #tpu.memory_space<vmem>>, vector<8x64xf32>
    tpu.vector_store %arg4[%c0_5, %c0_6], %6 {strides = array<i32>} : memref<8x64xf32, #tpu.memory_space<vmem>>, vector<8x64xf32>,
    return
  }
  func.func @transform_0(%arg0: i32) -> (i32, i32) {
    %c0_i32 = arith.constant 0 : i32
    %c0_i32_0 = arith.constant 0 : i32
    return %arg0, %c0_i32 : i32, i32
  }
  func.func @transform_1(%arg0: i32) -> (i32, i32) {
    %c0_i32 = arith.constant 0 : i32
    %c0_i32_0 = arith.constant 0 : i32
    %c0_i32_1 = arith.constant 0 : i32
    return %c0_i32, %c0_i32_0 : i32, i32
  }
  func.func @transform_2(%arg0: i32) -> (i32, i32) {
    %c0_i32 = arith.constant 0 : i32
    %c0_i32_0 = arith.constant 0 : i32
    %c0_i32_1 = arith.constant 0 : i32
    return %c0_i32, %c0_i32_0 : i32, i32
  }
  func.func @transform_3(%arg0: i32) -> (i32, i32) {
    %c0_i32 = arith.constant 0 : i32
    %c0_i32_0 = arith.constant 0 : i32
    return %arg0, %c0_i32 : i32, i32
  }
}

</mosaic_0001>

<bundles_post_ra>
// kernel: sketch_fc_forward.1
= control target key start
LH: loop header
LB: loop body
LE: loop exit
PB: predicated region body
PF: predicated region fallthrough
CT: control target
= control target key end

     0   :  { %8 = vsyncpa [#allocation3], 0  ;;  %s1042_s0 = inlined_call_operand.hbm [shape: f32[8,2048], index: 0, kind: input, shape index: {}]   ;;  %s1043_s1 = inlined_call_operand.hbm [shape: bf16[64,2048], index: 1, kind: input, shape index: {}]   ;;  %s1044_s2 = inlined_call_operand.vmem [shape: f32[1,64], index: 2, kind: input, shape index: {}]   ;;  %s1045_s3 = inlined_call_operand.hbm [shape: f32[8,64], index: 3, kind: output, shape index: {}]  }
   0x1   :  { %9 = vsyncpa [#allocation6], 0 }
   0x2   :  { %10 = vsyncpa [#allocation4], 0  ;;  %s971_s12 = smov [#allocation2]   ;;  %s972_s14 = smov [#allocation5]  }
   0x3   :  { %s17_s13 = sshll.u32 %s971_s12, 4  ;;  %s26_s15 = sshll.u32 %s972_s14, 4  ;;  %s18_s13 = int_to_ptr.vmem [resolvable:$true] %s17_s13  ;;  %s996_s15 = int_to_ptr.vmem [resolvable:$true] %s26_s15 }
   0x4   :  { %s899_s18 = scalar_lea.hbm %s1042_s0, 2048 }
   0x5   :  { %p900_p0 = scmp.ne.s32.totalorder %s1042_s0, %s899_s18  ;;  %p903_p1 = scmp.lt.u32.totalorder %s899_s18, %s1042_s0 }
   0x7   :  { %p905_p2 = pnand %p903_p1, %p900_p0 }
   0x9   :  { %908 = shalt.err (!%p905_p2)
}
   0xa   :  { %s909_s23 = scalar_lea.vmem %s18_s13, 2048  ;;  %p914_p4 = scmp.lt.s32.totalorder %s18_s13, %s18_s13 }
   0xb   :  { %p910_p3 = scmp.ne.s32.totalorder %s18_s13, %s909_s23  ;;  %p915_p5 = scmp.lt.s32.totalorder %s909_s23, %s909_s23 }
   0xd   :  { %p916_p6 = por %p915_p5, %p914_p4 }
   0xf   :  { %p917_p7 = pnand %p916_p6, %p910_p3 }
  0x11   :  { %920 = shalt.err (!%p917_p7)
}
  0x12   :  { %20 = dma.hbm_to_vmem [thread:$0]  %s1042_s0, 2048, %s18_s13, [#allocation3]  }
  0x13   :  { %s921_s28 = scalar_lea.hbm %s1043_s1, 8192 }
  0x14   :  { %p922_p8 = scmp.ne.s32.totalorder %s1043_s1, %s921_s28  ;;  %p925_p9 = scmp.lt.u32.totalorder %s921_s28, %s1043_s1 }
  0x16   :  { %p927_p10 = pnand %p925_p9, %p922_p8 }
  0x18   :  { %930 = shalt.err (!%p927_p10)
}
  0x19   :  { %s931_s6 = scalar_lea.vmem %s996_s15, 8192  ;;  %p936_p12 = scmp.lt.s32.totalorder %s996_s15, %s996_s15 }
  0x1a   :  { %p932_p11 = scmp.ne.s32.totalorder %s996_s15, %s931_s6  ;;  %p937_p13 = scmp.lt.s32.totalorder %s931_s6, %s931_s6 }
  0x1c   :  { %p938_p0 = por %p937_p13, %p936_p12 }
  0x1e   :  { %p939_p1 = pnand %p938_p0, %p932_p11 }
  0x20   :  { %942 = shalt.err (!%p939_p1)
}
  0x21   :  { %s973_s0 = smov 1024   ;;  %s974_s7 = smov 64  }
  0x22   :  { %32 = dma.hbm_to_vmem [thread:$0]  %s1043_s1, 8192, %s996_s15, [#allocation6], %s973_s0, %s973_s0, %s974_s7  }
  0x23   :  { %965 = dma.done.wait [#allocation3], 2048  }
  0x24   :  { %966 = vsyncadd [#allocation3], 4294965248 }
  0x25   :  { %967 = dma.done.wait [#allocation6], 8192  }
  0x26   :  { %968 = vsyncadd [#allocation6], 4294959104  ;;  %v74_v0 = vld [vmem:[#allocation5] sm:$0xff]  ;;  %v43_v14 = vld [vmem:[#allocation2 + $0x8] sm:$0xff]  ;;  %s975_s11 = smov [#allocation7]   ;;  %vm785_vm0 = vcmask 523264  }
  0x27   :  { %v82_v1 = vld [vmem:[#allocation5 + $0x40] sm:$0xff]  ;;  %v59_v17 = vpack.c.bf16 %v43_v14, %v43_v14  ;;  %v51_v18 = vld [vmem:[#allocation2 + $0x48] sm:$0xff]  ;;  %v45_v49 = vld [vmem:[#allocation2 + $0x18] sm:$0xff]  ;;  %s793_s12 = sshll.u32 %s975_s11, 4  ;;  %s794_s12 = int_to_ptr.vmem [resolvable:$true] %s793_s12 }
  0x28   :  { %v78_v2 = vld [vmem:[#allocation5 + $0x20] sm:$0xff]  ;;  %v805_v3 = vcombine.high %v74_v0, %v82_v1  ;;  %v804_v5 = vcombine.low %v74_v0, %v82_v1  ;;  %v67_v21 = vpack.c.bf16 %v51_v18, %v51_v18  ;;  %v75_v34 = vld [vmem:[#allocation5 + $0x8] sm:$0xff]  ;;  %v53_v52 = vld [vmem:[#allocation2 + $0x58] sm:$0xff]  ;;  %v61_v56 = vpack.c.bf16 %v45_v49, %v45_v49  ;;  %s943_s13 = scalar_lea.vmem %s794_s12, 128  ;;  %p948_p3 = scmp.lt.s32.totalorder %s794_s12, %s794_s12 }
  0x29   :  { %v86_v4 = vld [vmem:[#allocation5 + $0x60] sm:$0xff]  ;;  %497 = vmatprep.mubr.bf16.mxu1 %v59_v17  ;;  %v83_v35 = vld [vmem:[#allocation5 + $0x48] sm:$0xff]  ;;  %v69_v57 = vpack.c.bf16 %v53_v52, %v53_v52  ;;  %v44_v18 = vld [vmem:[#allocation2 + $0x10] sm:$0xff]  ;;  %p944_p2 = scmp.ne.s32.totalorder %s794_s12, %s943_s13  ;;  %p949_p4 = scmp.lt.s32.totalorder %s943_s13, %s943_s13 }
  0x2a   :  { %v90_v6 = vld [vmem:[#allocation5 + $0x80] sm:$0xff]  ;;  %v813_v8 = vcombine.high %v78_v2, %v86_v4  ;;  %v812_v9 = vcombine.low %v78_v2, %v86_v4  ;;  %465 = vmatprep.subr.bf16.mxu1 %v805_v3  ;;  %657 = vmatprep.mubr.bf16.mxu0 %v67_v21  ;;  %v79_v36 = vld [vmem:[#allocation5 + $0x28] sm:$0xff]  ;;  %v807_v40 = vcombine.high %v75_v34, %v83_v35  ;;  %v100_v21 = vld [vmem:[#allocation5 + $0xd0] sm:$0xff] }
  0x2b   :  { %v98_v7 = vld [vmem:[#allocation5 + $0xc0] sm:$0xff]  ;;  %466 = vmatpush1.bf16.xpose.msra.mxu1 %v804_v5  ;;  %v87_v37 = vld [vmem:[#allocation5 + $0x68] sm:$0xff]  ;;  %v806_v50 = vcombine.low %v75_v34, %v83_v35  ;;  %v108_v34 = vld [vmem:[#allocation5 + $0x110] sm:$0xff]  ;;  %p950_p5 = por %p949_p4, %p948_p3 }
  0x2c   :  { %v821_v10 = vcombine.high %v90_v6, %v98_v7  ;;  %v94_v11 = vld [vmem:[#allocation5 + $0xa0] sm:$0xff]  ;;  %625 = vmatprep.subr.bf16.mxu0 %v813_v8  ;;  %v820_v22 = vcombine.low %v90_v6, %v98_v7  ;;  %v815_v41 = vcombine.high %v79_v36, %v87_v37  ;;  %v91_v44 = vld [vmem:[#allocation5 + $0x88] sm:$0xff]  ;;  %v814_v53 = vcombine.low %v79_v36, %v87_v37  ;;  %v116_v35 = vld [vmem:[#allocation5 + $0x150] sm:$0xff] }
  0x2d   :  { %v102_v12 = vld [vmem:[#allocation5 + $0xe0] sm:$0xff]  ;;  %626 = vmatpush1.bf16.xpose.msra.mxu0 %v812_v9  ;;  %v99_v45 = vld [vmem:[#allocation5 + $0xc8] sm:$0xff]  ;;  %v112_v36 = vld [vmem:[#allocation5 + $0x130] sm:$0xff]  ;;  %p951_p6 = pnand %p950_p5, %p944_p2 }
  0x2e   :  { %v829_v13 = vcombine.high %v94_v11, %v102_v12  ;;  %467 = vmatprep.subr.bf16.mxu1 %v821_v10  ;;  %v106_v15 = vld [vmem:[#allocation5 + $0x100] sm:$0xff]  ;;  %v828_v23 = vcombine.low %v94_v11, %v102_v12  ;;  %v95_v47 = vld [vmem:[#allocation5 + $0xa8] sm:$0xff]  ;;  %v823_v54 = vcombine.high %v91_v44, %v99_v45  ;;  %v822_v62 = vcombine.low %v91_v44, %v99_v45  ;;  %v76_v10 = vld [vmem:[#allocation5 + $0x10] sm:$0xff] }
  0x2f   :  { %v114_v16 = vld [vmem:[#allocation5 + $0x140] sm:$0xff]  ;;  %v103_v48 = vld [vmem:[#allocation5 + $0xe8] sm:$0xff]  ;;  %v84_v11 = vld [vmem:[#allocation5 + $0x50] sm:$0xff] }
  0x30   :  { %627 = vmatprep.subr.bf16.mxu0 %v829_v13  ;;  %v110_v19 = vld [vmem:[#allocation5 + $0x120] sm:$0xff]  ;;  %v837_v24 = vcombine.high %v106_v15, %v114_v16  ;;  %v836_v30 = vcombine.low %v106_v15, %v114_v16  ;;  %v831_v55 = vcombine.high %v95_v47, %v103_v48  ;;  %v107_v58 = vld [vmem:[#allocation5 + $0x108] sm:$0xff]  ;;  %v830_v63 = vcombine.low %v95_v47, %v103_v48  ;;  %v80_v12 = vld [vmem:[#allocation5 + $0x30] sm:$0xff] }
  0x31   :  { %v118_v20 = vld [vmem:[#allocation5 + $0x160] sm:$0xff]  ;;  %v115_v59 = vld [vmem:[#allocation5 + $0x148] sm:$0xff]  ;;  %v88_v13 = vld [vmem:[#allocation5 + $0x70] sm:$0xff]  ;;  %v809_v16 = vcombine.high %v76_v10, %v84_v11 }
  0x32   :  { %v845_v25 = vcombine.high %v110_v19, %v118_v20  ;;  %v122_v26 = vld [vmem:[#allocation5 + $0x180] sm:$0xff]  ;;  %v844_v31 = vcombine.low %v110_v19, %v118_v20  ;;  %v111_v60 = vld [vmem:[#allocation5 + $0x128] sm:$0xff]  ;;  %v839_v0 = vcombine.high %v107_v58, %v115_v59  ;;  %v838_v6 = vcombine.low %v107_v58, %v115_v59  ;;  %v52_v19 = vld [vmem:[#allocation2 + $0x50] sm:$0xff] }
  0x33   :  { %468 = vmatpush1.bf16.xpose.msra.mxu1 %v820_v22  ;;  %v130_v27 = vld [vmem:[#allocation5 + $0x1c0] sm:$0xff]  ;;  %v119_v61 = vld [vmem:[#allocation5 + $0x168] sm:$0xff]  ;;  %v817_v17 = vcombine.high %v80_v12, %v88_v13  ;;  %v92_v20 = vld [vmem:[#allocation5 + $0x90] sm:$0xff]  ;;  %v60_v22 = vpack.c.bf16 %v44_v18, %v44_v18 }
  0x34   :  { %469 = vmatprep.subr.bf16.mxu1 %v837_v24  ;;  %v126_v28 = vld [vmem:[#allocation5 + $0x1a0] sm:$0xff]  ;;  %v853_v32 = vcombine.high %v122_v26, %v130_v27  ;;  %v852_v38 = vcombine.low %v122_v26, %v130_v27  ;;  %v847_v1 = vcombine.high %v111_v60, %v119_v61  ;;  %v123_v2 = vld [vmem:[#allocation5 + $0x188] sm:$0xff]  ;;  %v846_v7 = vcombine.low %v111_v60, %v119_v61  ;;  %v104_v24 = vld [vmem:[#allocation5 + $0xf0] sm:$0xff] }
  0x35   :  { %628 = vmatpush1.bf16.xpose.msra.mxu0 %v828_v23  ;;  %v134_v29 = vld [vmem:[#allocation5 + $0x1e0] sm:$0xff]  ;;  %v131_v3 = vld [vmem:[#allocation5 + $0x1c8] sm:$0xff]  ;;  %v96_v23 = vld [vmem:[#allocation5 + $0xb0] sm:$0xff]  ;;  %v808_v26 = vcombine.low %v76_v10, %v84_v11  ;;  %v68_v27 = vpack.c.bf16 %v52_v19, %v52_v19 }
  0x36   :  { %629 = vmatprep.subr.bf16.mxu0 %v845_v25  ;;  %v861_v33 = vcombine.high %v126_v28, %v134_v29  ;;  %v860_v39 = vcombine.low %v126_v28, %v134_v29  ;;  %v42_v42 = vld [vmem:[#allocation2] sm:$0xff]  ;;  %v127_v4 = vld [vmem:[#allocation5 + $0x1a8] sm:$0xff]  ;;  %v855_v8 = vcombine.high %v123_v2, %v131_v3  ;;  %v854_v14 = vcombine.low %v123_v2, %v131_v3  ;;  %v120_v37 = vld [vmem:[#allocation5 + $0x170] sm:$0xff] }
  0x37   :  { %v50_v43 = vld [vmem:[#allocation2 + $0x40] sm:$0xff]  ;;  %v58_v46 = vpack.c.bf16 %v42_v42, %v42_v42  ;;  %v135_v5 = vld [vmem:[#allocation5 + $0x1e8] sm:$0xff]  ;;  %v816_v29 = vcombine.low %v80_v12, %v88_v13  ;;  %v124_v42 = vld [vmem:[#allocation5 + $0x190] sm:$0xff]  ;;  %v848_v47 = vcombine.low %v112_v36, %v120_v37 }
  0x38   :  { %v66_v51 = vpack.c.bf16 %v50_v43, %v50_v43  ;;  %v863_v9 = vcombine.high %v127_v4, %v135_v5  ;;  %v862_v15 = vcombine.low %v127_v4, %v135_v5  ;;  %v47_v25 = vld [vmem:[#allocation2 + $0x28] sm:$0xff]  ;;  %v132_v43 = vld [vmem:[#allocation5 + $0x1d0] sm:$0xff]  ;;  %v81_v52 = vld [vmem:[#allocation5 + $0x38] sm:$0xff] }
  0x39   :  { %v55_v28 = vld [vmem:[#allocation2 + $0x68] sm:$0xff]  ;;  %v128_v44 = vld [vmem:[#allocation5 + $0x1b0] sm:$0xff]  ;;  %v857_v48 = vcombine.high %v124_v42, %v132_v43  ;;  %v46_v58 = vld [vmem:[#allocation2 + $0x20] sm:$0xff] }
  0x3a   :  { %v136_v45 = vld [vmem:[#allocation5 + $0x1f0] sm:$0xff]  ;;  %v54_v59 = vld [vmem:[#allocation2 + $0x60] sm:$0xff]  ;;  %v93_v60 = vld [vmem:[#allocation5 + $0x98] sm:$0xff] }
  0x3b   :  { %470 = vmatpush1.bf16.xpose.msra.mxu1 %v836_v30  ;;  %v825_v30 = vcombine.high %v92_v20, %v100_v21  ;;  %v865_v49 = vcombine.high %v128_v44, %v136_v45  ;;  %v101_v61 = vld [vmem:[#allocation5 + $0xd8] sm:$0xff]  ;;  %v70_v3 = vpack.c.bf16 %v54_v59, %v54_v59 }
  0x3c   :  { %471 = vmatprep.subr.bf16.mxu1 %v853_v32  ;;  %v63_v32 = vpack.c.bf16 %v47_v25, %v47_v25  ;;  %v57_v4 = vld [vmem:[#allocation2 + $0x78] sm:$0xff] }
  0x3d   :  { %630 = vmatpush1.bf16.xpose.msra.mxu0 %v844_v31  ;;  %v833_v31 = vcombine.high %v96_v23, %v104_v24  ;;  %v109_v10 = vld [vmem:[#allocation5 + $0x118] sm:$0xff] }
  0x3e   :  { %631 = vmatprep.subr.bf16.mxu0 %v861_v33  ;;  %v71_v33 = vpack.c.bf16 %v55_v28, %v55_v28  ;;  %v117_v11 = vld [vmem:[#allocation5 + $0x158] sm:$0xff]  ;;  %v48_v28 = vld [vmem:[#allocation2 + $0x30] sm:$0xff] }
  0x3f   :  { %v113_v12 = vld [vmem:[#allocation5 + $0x138] sm:$0xff] }
  0x40   :  { %v121_v13 = vld [vmem:[#allocation5 + $0x178] sm:$0xff] }
  0x41   :  { %v125_v18 = vld [vmem:[#allocation5 + $0x198] sm:$0xff] }
  0x42   :  { %v133_v19 = vld [vmem:[#allocation5 + $0x1d8] sm:$0xff] }
  0x43   :  { %472 = vmatpush1.bf16.xpose.msra.mxu1 %v852_v38  ;;  %v824_v38 = vcombine.low %v92_v20, %v100_v21  ;;  %v129_v20 = vld [vmem:[#allocation5 + $0x1b8] sm:$0xff] }
  0x44   :  { %505 = vmatprep.subr.bf16.mxu1 %v807_v40  ;;  %v841_v40 = vcombine.high %v108_v34, %v116_v35  ;;  %v137_v21 = vld [vmem:[#allocation5 + $0x1f8] sm:$0xff] }
  0x45   :  { %632 = vmatpush1.bf16.xpose.msra.mxu0 %v860_v39  ;;  %v832_v39 = vcombine.low %v96_v23, %v104_v24  ;;  %v850_v23 = vcombine.low %v113_v12, %v121_v13  ;;  %v859_v24 = vcombine.high %v125_v18, %v133_v19  ;;  %v867_v25 = vcombine.high %v129_v20, %v137_v21 }
  0x46   :  { %665 = vmatprep.subr.bf16.mxu0 %v815_v41  ;;  %v849_v41 = vcombine.high %v112_v36, %v120_v37 }
  0x4a   :  { %498 = vmatmul.mubr.bf16.vlgmr.msra.gmra.mrb[0].mxu1 %v58_v46  ;;  %v840_v46 = vcombine.low %v108_v34, %v116_v35 }
  0x4b   :  { %506 = vmatpush1.bf16.xpose.msra.mxu1 %v806_v50  ;;  %537 = vmatprep.mubr.bf16.mxu1 %v61_v56  ;;  %v77_v50 = vld [vmem:[#allocation5 + $0x18] sm:$0xff] }
  0x4c   :  { %658 = vmatmul.mubr.bf16.vlgmr.msra.gmra.mrb[0].mxu0 %v66_v51  ;;  %507 = vmatprep.subr.bf16.mxu1 %v823_v54  ;;  %v85_v51 = vld [vmem:[#allocation5 + $0x58] sm:$0xff]  ;;  %v856_v54 = vcombine.low %v124_v42, %v132_v43 }
  0x4d   :  { %666 = vmatpush1.bf16.xpose.msra.mxu0 %v814_v53  ;;  %697 = vmatprep.mubr.bf16.mxu0 %v69_v57  ;;  %v89_v53 = vld [vmem:[#allocation5 + $0x78] sm:$0xff]  ;;  %v811_v56 = vcombine.high %v77_v50, %v85_v51  ;;  %v810_v2 = vcombine.low %v77_v50, %v85_v51 }
  0x4e   :  { %667 = vmatprep.subr.bf16.mxu0 %v831_v55  ;;  %v864_v55 = vcombine.low %v128_v44, %v136_v45  ;;  %v819_v57 = vcombine.high %v81_v52, %v89_v53  ;;  %v818_v5 = vcombine.low %v81_v52, %v89_v53 }
  0x53   :  { %508 = vmatpush1.bf16.xpose.msra.mxu1 %v822_v62  ;;  %v62_v62 = vpack.c.bf16 %v46_v58, %v46_v58 }
  0x54   :  { %509 = vmatprep.subr.bf16.mxu1 %v839_v0  ;;  %v105_v0 = vld [vmem:[#allocation5 + $0xf8] sm:$0xff] }
  0x55   :  { %668 = vmatpush1.bf16.xpose.msra.mxu0 %v830_v63  ;;  %v97_v63 = vld [vmem:[#allocation5 + $0xb8] sm:$0xff] }
  0x56   :  { %669 = vmatprep.subr.bf16.mxu0 %v847_v1  ;;  %v49_v1 = vld [vmem:[#allocation2 + $0x38] sm:$0xff] }
  0x5b   :  { %510 = vmatpush1.bf16.xpose.msra.mxu1 %v838_v6  ;;  %v827_v6 = vcombine.high %v93_v60, %v101_v61 }
  0x5c   :  { %511 = vmatprep.subr.bf16.mxu1 %v855_v8  ;;  %v65_v8 = vpack.c.bf16 %v49_v1, %v49_v1 }
  0x5d   :  { %670 = vmatpush1.bf16.xpose.msra.mxu0 %v846_v7  ;;  %v835_v7 = vcombine.high %v97_v63, %v105_v0 }
  0x5e   :  { %671 = vmatprep.subr.bf16.mxu0 %v863_v9  ;;  %v73_v9 = vpack.c.bf16 %v57_v4, %v57_v4 }
  0x63   :  { %512 = vmatpush1.bf16.xpose.msra.mxu1 %v854_v14  ;;  %v826_v14 = vcombine.low %v93_v60, %v101_v61 }
  0x64   :  { %545 = vmatprep.subr.bf16.mxu1 %v809_v16  ;;  %v843_v16 = vcombine.high %v109_v10, %v117_v11 }
  0x65   :  { %672 = vmatpush1.bf16.xpose.msra.mxu0 %v862_v15  ;;  %v834_v15 = vcombine.low %v97_v63, %v105_v0 }
  0x66   :  { %705 = vmatprep.subr.bf16.mxu0 %v817_v17  ;;  %v851_v17 = vcombine.high %v113_v12, %v121_v13 }
  0x6a   :  { %538 = vmatmul.mubr.bf16.vlgmr.msra.gmra.mrb[0].mxu1 %v60_v22  ;;  %v842_v22 = vcombine.low %v109_v10, %v117_v11 }
  0x6b   :  { %546 = vmatpush1.bf16.xpose.msra.mxu1 %v808_v26  ;;  %577 = vmatprep.mubr.bf16.mxu1 %v63_v32  ;;  %v858_v26 = vcombine.low %v125_v18, %v133_v19  ;;  %v803_v32 = vld [vmem:[%s1044_s2] ss:$0 sm:$0xff] }
  0x6c   :  { %698 = vmatmul.mubr.bf16.vlgmr.msra.gmra.mrb[0].mxu0 %v68_v27  ;;  %547 = vmatprep.subr.bf16.mxu1 %v825_v30  ;;  %v866_v27 = vcombine.low %v129_v20, %v137_v21  ;;  %v64_v30 = vpack.c.bf16 %v48_v28, %v48_v28 }
  0x6d   :  { %706 = vmatpush1.bf16.xpose.msra.mxu0 %v816_v29  ;;  %737 = vmatprep.mubr.bf16.mxu0 %v71_v33  ;;  %v56_v29 = vld [vmem:[#allocation2 + $0x70] sm:$0xff] }
  0x6e   :  { %707 = vmatprep.subr.bf16.mxu0 %v833_v31  ;;  %v72_v31 = vpack.c.bf16 %v56_v29, %v56_v29 }
  0x73   :  { %548 = vmatpush1.bf16.xpose.msra.mxu1 %v824_v38 }
  0x74   :  { %549 = vmatprep.subr.bf16.mxu1 %v841_v40 }
  0x75   :  { %708 = vmatpush1.bf16.xpose.msra.mxu0 %v832_v39 }
  0x76   :  { %709 = vmatprep.subr.bf16.mxu0 %v849_v41 }
  0x7b   :  { %550 = vmatpush1.bf16.xpose.msra.mxu1 %v840_v46 }
  0x7c   :  { %551 = vmatprep.subr.bf16.mxu1 %v857_v48 }
  0x7d   :  { %710 = vmatpush1.bf16.xpose.msra.mxu0 %v848_v47 }
  0x7e   :  { %711 = vmatprep.subr.bf16.mxu0 %v865_v49 }
  0x83   :  { %552 = vmatpush1.bf16.xpose.msra.mxu1 %v856_v54 }
  0x84   :  { %585 = vmatprep.subr.bf16.mxu1 %v811_v56 }
  0x85   :  { %712 = vmatpush1.bf16.xpose.msra.mxu0 %v864_v55 }
  0x86   :  { %745 = vmatprep.subr.bf16.mxu0 %v819_v57 }
  0x8a   :  { %578 = vmatmul.mubr.bf16.vlgmr.msra.gmra.mrb[0].mxu1 %v62_v62 }
  0x8b   :  { %586 = vmatpush1.bf16.xpose.msra.mxu1 %v810_v2  ;;  %617 = vmatprep.mubr.bf16.mxu1 %v65_v8 }
  0x8c   :  { %738 = vmatmul.mubr.bf16.vlgmr.msra.gmra.mrb[0].mxu0 %v70_v3  ;;  %587 = vmatprep.subr.bf16.mxu1 %v827_v6 }
  0x8d   :  { %746 = vmatpush1.bf16.xpose.msra.mxu0 %v818_v5  ;;  %777 = vmatprep.mubr.bf16.mxu0 %v73_v9 }
  0x8e   :  { %747 = vmatprep.subr.bf16.mxu0 %v835_v7 }
  0x93   :  { %588 = vmatpush1.bf16.xpose.msra.mxu1 %v826_v14 }
  0x94   :  { %589 = vmatprep.subr.bf16.mxu1 %v843_v16 }
  0x95   :  { %748 = vmatpush1.bf16.xpose.msra.mxu0 %v834_v15 }
  0x96   :  { %749 = vmatprep.subr.bf16.mxu0 %v851_v17 }
  0x9b   :  { %590 = vmatpush1.bf16.xpose.msra.mxu1 %v842_v22 }
  0x9c   :  { %591 = vmatprep.subr.bf16.mxu1 %v859_v24 }
  0x9d   :  { %750 = vmatpush1.bf16.xpose.msra.mxu0 %v850_v23 }
  0x9e   :  { %751 = vmatprep.subr.bf16.mxu0 %v867_v25 }
  0xa3   :  { %592 = vmatpush1.bf16.xpose.msra.mxu1 %v858_v26 }
  0xa5   :  { %752 = vmatpush1.bf16.xpose.msra.mxu0 %v866_v27 }
  0xaa   :  { %618 = vmatmul.mubr.bf16.vlgmr.msra.gmra.mrb[0].mxu1 %v64_v30 }
  0xac   :  { %778 = vmatmul.mubr.bf16.vlgmr.msra.gmra.mrb[0].mxu0 %v72_v31 }
 0x17d   :  { %v619_v33 = vpop.f32.mrb[0].mxu1 }
 0x17e   :  { %v868_v34 = vadd.f32 %v803_v32, %v619_v33  ;;  %v621_v36 = vpop.f32.mrb[1].mxu1 }
 0x17f   :  { %v779_v35 = vpop.f32.mrb[0].mxu0  ;;  %v622_v38 = vpop.f32.mrb[2].mxu1 }
 0x180   :  { %v781_v37 = vpop.f32.mrb[1].mxu0  ;;  %v869_v39 = vadd.f32 %v868_v34, %v779_v35  ;;  %v623_v41 = vpop.f32.mrb[3].mxu1 }
 0x181   :  { %v782_v40 = vpop.f32.mrb[2].mxu0 }
 0x182   :  { %v783_v42 = vpop.f32.mrb[3].mxu0  ;;  %786 = vst.msk [vmem:[#allocation7] sm:$0xff] %vm785_vm0, %v869_v39 }
 0x183   :  { %954 = shalt.err (!%p951_p6)
}
 0x184   :  { %s955_s15 = scalar_lea.hbm %s1045_s3, 128 }
 0x185   :  { %p956_p7 = scmp.ne.s32.totalorder %s1045_s3, %s955_s15  ;;  %p959_p8 = scmp.lt.u32.totalorder %s955_s15, %s1045_s3 }
 0x187   :  { %p961_p9 = pnand %p959_p8, %p956_p7 }
 0x189   :  { %964 = shalt.err (!%p961_p9)
}
 0x18a   :  { %796 = dma.vmem_to_hbm [thread:$0]  %s794_s12, 128, %s1045_s3, [#allocation4]  }
 0x18b   :  { %969 = dma.done.wait [#allocation4], 128  }
 0x18c   :  { %970 = vsyncadd [#allocation4], 4294967168 }
 0x18d   :  { %800 = vsyncpa [#allocation3], 1 }
 0x18e   :  { %801 = vsyncpa [#allocation6], 1 }
 0x18f   :  { %802 = vsyncpa [#allocation4], 1 }

</bundles_post_ra>
